<compile_context>
chip_gen: v5e
topology: v5e:2x2
jax: 0.10.0
libtpu: 0.0.40
codegen_flags: <defaults>
</compile_context>

<pallas_src>
import jax
import jax.numpy as jnp
from jax.experimental import pallas as pl
from jax.experimental.pallas import tpu as pltpu

_LANES = 128  # full vreg lane width; blocks span full rows -> contiguous HBM DMAs


def _make_kernel(n_valid: int, block_rows: int):
    lanes = _LANES

    def kernel(ymax_ref, y_ref, yhat_ref, out_ref):
        g = pl.program_id(0)
        last = pl.num_programs(0) - 1

        @pl.when(g == 0)
        def _init():
            out_ref[...] = jnp.zeros_like(out_ref)

        # In-kernel dtype cast: inputs arrive in native dtype, cast is free VPU
        # work under the DMA.
        y = y_ref[...].astype(jnp.float32)
        yhat = jnp.round(yhat_ref[...].astype(jnp.float32))  # torch.round (half-to-even)
        ymax = ymax_ref[0]                                    # scalar-prefetched max(y)
        yhat = jnp.where(yhat > ymax, ymax, yhat)
        match = yhat == y

        def _accumulate(m_bool):
            m = m_bool.astype(jnp.int32)
            # Sublane-preserving partial reduce: pure cross-vreg VPU adds into the
            # resident (8, 128) output block; no XLU, no loop-carried scalar.
            out_ref[...] += m.reshape(block_rows // 8, 8, lanes).sum(axis=0)

        # Fast path: every block except the last is fully valid -> no mask work.
        @pl.when(g < last)
        def _full_block():
            _accumulate(match)

        # Only the final block can contain padding / out-of-range rows.
        @pl.when(g == last)
        def _tail_block():
            row = jax.lax.broadcasted_iota(jnp.int32, (block_rows, lanes), 0)
            lane = jax.lax.broadcasted_iota(jnp.int32, (block_rows, lanes), 1)
            local = row * lanes + lane                  # block-constant vector index
            thresh = n_valid - g * block_rows * lanes   # scalar-unit arithmetic
            _accumulate(match & (local < thresh))

    return kernel


def _likely_loss_pallas(y: jax.Array, yhat: jax.Array, *, block_rows=None) -> jax.Array:
    n = y.shape[0]
    # Global max over the (unpadded) labels — one XLA reduction, fed via scalar
    # prefetch so the per-tile path has no global dependency.
    ymax = jnp.max(y).astype(jnp.float32).reshape(1)

    rows = pl.cdiv(n, _LANES)
    rows_padded = ((rows + 7) // 8) * 8        # sublane-aligned row count
    total = rows_padded * _LANES
    if total != n:                              # skipped entirely when n % 1024 == 0
        pad = total - n
        y = jnp.pad(y, (0, pad))
        yhat = jnp.pad(yhat, (0, pad))
    y2 = y.reshape(rows_padded, _LANES)         # free bitcast (row-major contiguous)
    yhat2 = yhat.reshape(rows_padded, _LANES)

    itemsize = jnp.dtype(y2.dtype).itemsize + jnp.dtype(yhat2.dtype).itemsize
    if block_rows is None:
        # ~2 MiB per input per pipeline buffer: 2 inputs x 2 buffers = ~8 MiB VMEM,
        # safe on v5e's 16 MiB scoped default and v7x's 64 MiB physical VMEM.
        block_rows = (4 * 1024 * 1024) // (_LANES * itemsize)
    block_rows = max(8, (block_rows // 8) * 8)
    block_rows = min(block_rows, rows_padded)
    nblocks = pl.cdiv(rows_padded, block_rows)

    block_bytes = block_rows * _LANES * itemsize
    vmem_limit = int(min(64 * 1024 * 1024, max(32 * 1024 * 1024, 3 * block_bytes)))

    kernel = _make_kernel(n, block_rows)
    counts = pl.pallas_call(
        kernel,
        out_shape=jax.ShapeDtypeStruct((8, _LANES), jnp.int32),
        grid_spec=pltpu.PrefetchScalarGridSpec(
            num_scalar_prefetch=1,
            grid=(nblocks,),
            in_specs=[
                pl.BlockSpec((block_rows, _LANES), lambda g, ymax_ref: (g, 0)),
                pl.BlockSpec((block_rows, _LANES), lambda g, ymax_ref: (g, 0)),
            ],
            out_specs=pl.BlockSpec((8, _LANES), lambda g, ymax_ref: (0, 0)),
        ),
        compiler_params=pltpu.CompilerParams(
            dimension_semantics=("arbitrary",),
            vmem_limit_bytes=vmem_limit,
        ),
    )(ymax, y2, yhat2)

    # Exact integer match count; divide by N exactly once.
    return jnp.sum(counts).astype(jnp.float32) / jnp.float32(n)


def _reference(y, yhat):
    """Pure-JAX mirror of LikelyLoss.forward (also used as the small-N fast path)."""
    yf = y.astype(jnp.float32)
    yh = jnp.round(yhat.astype(jnp.float32))
    ymax = jnp.max(yf)
    yh = jnp.where(yh > ymax, ymax, yh)
    acc_num = jnp.sum(jnp.where(yh == yf, 1.0, 0.0))
    return acc_num / y.shape[0]


def likely_loss(y: jax.Array, yhat: jax.Array, *, block_rows=None,
                min_pallas_elems: int = 1 << 20) -> jax.Array:
    """LikelyLoss.forward(y, yhat) -> scalar accuracy."""
    assert y.ndim == 1 and yhat.shape == y.shape, "expects 1-D y / yhat of equal length"
    n = y.shape[0]
    if n < min_pallas_elems:
        # Small-N fast path: pad + prefetch + grid-launch overhead would dominate.
        return _reference(y, yhat)
    return _likely_loss_pallas(y, yhat, block_rows=block_rows)


if __name__ == "__main__":
    key = jax.random.PRNGKey(0)
    k1, k2, k3, k4, k5, k6 = jax.random.split(key, 6)

    # Case 1: tiny batch (module's intended use: classification, one output node).
    N = 8
    y = jax.random.randint(k1, (N,), 0, 4).astype(jnp.float32)
    yhat = y + jax.random.normal(k2, (N,), dtype=jnp.float32) * 0.8
    acc = likely_loss(y, yhat, min_pallas_elems=0)      # force the Pallas path
    jax.block_until_ready(acc)
    assert jnp.allclose(acc, _reference(y, yhat), atol=1e-6), (acc, _reference(y, yhat))

    # Case 2: several grid steps + partial/padded last block (small tiles forced).
    M = 5000
    yb = jax.random.randint(k3, (M,), 0, 4).astype(jnp.float32)
    yhatb = yb + jax.random.normal(k4, (M,), dtype=jnp.float32) * 0.8
    accb = likely_loss(yb, yhatb, block_rows=8, min_pallas_elems=0)
    jax.block_until_ready(accb)
    assert jnp.allclose(accb, _reference(yb, yhatb), atol=1e-6), (accb, _reference(yb, yhatb))

    # Case 3: pad-free path (N % 1024 == 0) + in-kernel bf16 -> f32 cast.
    P = 4096
    yc = jax.random.randint(k5, (P,), 0, 4).astype(jnp.float32)
    yhatc = (yc + jax.random.normal(k6, (P,), dtype=jnp.float32) * 0.8).astype(jnp.bfloat16)
    accc = likely_loss(yc, yhatc, block_rows=16, min_pallas_elems=0)
    jax.block_until_ready(accc)
    assert jnp.allclose(accc, _reference(yc, yhatc), atol=1e-6), (accc, _reference(yc, yhatc))

    print("KERNEL_OK")
</pallas_src>

<mosaic_0001>
module attributes {stable_mosaic.version = 11 : i64} {
  func.func @kernel(%arg0: i32, %arg1: memref<1xf32, #tpu.memory_space<smem>>, %arg2: memref<8x128xf32, #tpu.memory_space<vmem>>, %arg3: memref<8x128xf32, #tpu.memory_space<vmem>>, %arg4: memref<8x128xi32, #tpu.memory_space<vmem>>) attributes {dimension_semantics = [#tpu.dimension_semantics<arbitrary>], iteration_bounds = array<i64: 1>, scalar_prefetch = 1 : i64, scratch_operands = 0 : i64, tpu.core_type = #tpu.core_type<tc>, window_params = [{transform_indices = @transform_0, window_bounds = array<i64: 8, 128>}, {transform_indices = @transform_1, window_bounds = array<i64: 8, 128>}, {pipeline_mode = #tpu.pipeline_mode<synchronous>, transform_indices = @transform_2, window_bounds = array<i64: 8, 128>}]} {
    %c0_i32 = arith.constant 0 : i32
    %0 = arith.cmpi eq, %arg0, %c0_i32 : i32
    %1 = arith.extui %0 : i1 to i32
    %c0_i32_0 = arith.constant 0 : i32
    %2 = arith.cmpi ne, %1, %c0_i32_0 : i32
    scf.if %2 {
      %c0_i32_9 = arith.constant 0 : i32
      %18 = vector.broadcast %c0_i32_9 : i32 to vector<8x128xi32>
      %c0_10 = arith.constant 0 : index
      %c0_11 = arith.constant 0 : index
      %19 = vector.load %arg4[%c0_10, %c0_11] : memref<8x128xi32, #tpu.memory_space<vmem>>, vector<8x128xi32>
      tpu.vector_store %arg4[%c0_10, %c0_11], %18 {strides = array<i32>} : memref<8x128xi32, #tpu.memory_space<vmem>>, vector<8x128xi32>,
    } else {
    }
    %c0 = arith.constant 0 : index
    %c0_1 = arith.constant 0 : index
    %3 = vector.load %arg2[%c0, %c0_1] : memref<8x128xf32, #tpu.memory_space<vmem>>, vector<8x128xf32>
    %c0_2 = arith.constant 0 : index
    %c0_3 = arith.constant 0 : index
    %4 = vector.load %arg3[%c0_2, %c0_3] : memref<8x128xf32, #tpu.memory_space<vmem>>, vector<8x128xf32>
    %5 = math.roundeven %4 : vector<8x128xf32>
    %c0_4 = arith.constant 0 : index
    %6 = memref.load %arg1[%c0_4] : memref<1xf32, #tpu.memory_space<smem>>
    %7 = vector.broadcast %6 : f32 to vector<8x128xf32>
    %8 = arith.cmpf ogt, %5, %7 : vector<8x128xf32>
    %9 = vector.broadcast %6 : f32 to vector<8x128xf32>
    %10 = arith.select %8, %9, %5 : vector<8x128xi1>, vector<8x128xf32>
    %11 = arith.cmpf oeq, %10, %3 : vector<8x128xf32>
    %c0_i32_5 = arith.constant 0 : i32
    %12 = arith.cmpi slt, %arg0, %c0_i32_5 : i32
    %13 = arith.extui %12 : i1 to i32
    %c0_i32_6 = arith.constant 0 : i32
    %14 = arith.cmpi ne, %13, %c0_i32_6 : i32
    scf.if %14 {
      %18 = arith.extui %11 : vector<8x128xi1> to vector<8x128xi32>
      %c0_9 = arith.constant 0 : index
      %c0_10 = arith.constant 0 : index
      %19 = vector.load %arg4[%c0_9, %c0_10] : memref<8x128xi32, #tpu.memory_space<vmem>>, vector<8x128xi32>
      %20 = vector.shape_cast %18 : vector<8x128xi32> to vector<1x8x128xi32>
      %cst = arith.constant dense<0> : vector<8x128xi32>
      %21 = vector.multi_reduction <add>, %20, %cst [0] : vector<1x8x128xi32> to vector<8x128xi32>
      %22 = arith.addi %19, %21 : vector<8x128xi32>
      %c0_11 = arith.constant 0 : index
      %c0_12 = arith.constant 0 : index
      %23 = vector.load %arg4[%c0_11, %c0_12] : memref<8x128xi32, #tpu.memory_space<vmem>>, vector<8x128xi32>
      tpu.vector_store %arg4[%c0_11, %c0_12], %22 {strides = array<i32>} : memref<8x128xi32, #tpu.memory_space<vmem>>, vector<8x128xi32>,
    } else {
    }
    %c0_i32_7 = arith.constant 0 : i32
    %15 = arith.cmpi eq, %arg0, %c0_i32_7 : i32
    %16 = arith.extui %15 : i1 to i32
    %c0_i32_8 = arith.constant 0 : i32
    %17 = arith.cmpi ne, %16, %c0_i32_8 : i32
    scf.if %17 {
      %18 = tpu.iota {dimensions = array<i32: 0>} : vector<8x128xi32>
      %19 = tpu.iota {dimensions = array<i32: 1>} : vector<8x128xi32>
      %c128_i32 = arith.constant 128 : i32
      %20 = vector.broadcast %c128_i32 : i32 to vector<8x128xi32>
      %21 = arith.muli %18, %20 : vector<8x128xi32>
      %22 = arith.addi %21, %19 : vector<8x128xi32>
      %c8_i32 = arith.constant 8 : i32
      %23 = arith.muli %arg0, %c8_i32 : i32
      %c128_i32_9 = arith.constant 128 : i32
      %24 = arith.muli %23, %c128_i32_9 : i32
      %c8_i32_10 = arith.constant 8 : i32
      %25 = arith.subi %c8_i32_10, %24 : i32
      %26 = vector.broadcast %25 : i32 to vector<8x128xi32>
      %27 = arith.cmpi slt, %22, %26 : vector<8x128xi32>
      %28 = arith.andi %11, %27 : vector<8x128xi1>
      %29 = arith.extui %28 : vector<8x128xi1> to vector<8x128xi32>
      %c0_11 = arith.constant 0 : index
      %c0_12 = arith.constant 0 : index
      %30 = vector.load %arg4[%c0_11, %c0_12] : memref<8x128xi32, #tpu.memory_space<vmem>>, vector<8x128xi32>
      %31 = vector.shape_cast %29 : vector<8x128xi32> to vector<1x8x128xi32>
      %cst = arith.constant dense<0> : vector<8x128xi32>
      %32 = vector.multi_reduction <add>, %31, %cst [0] : vector<1x8x128xi32> to vector<8x128xi32>
      %33 = arith.addi %30, %32 : vector<8x128xi32>
      %c0_13 = arith.constant 0 : index
      %c0_14 = arith.constant 0 : index
      %34 = vector.load %arg4[%c0_13, %c0_14] : memref<8x128xi32, #tpu.memory_space<vmem>>, vector<8x128xi32>
      tpu.vector_store %arg4[%c0_13, %c0_14], %33 {strides = array<i32>} : memref<8x128xi32, #tpu.memory_space<vmem>>, vector<8x128xi32>,
    } else {
    }
    return
  }
  func.func @transform_0(%arg0: i32, %arg1: memref<1xf32, #tpu.memory_space<smem>>) -> (i32, i32) {
    %c0_i32 = arith.constant 0 : i32
    %c0_i32_0 = arith.constant 0 : i32
    return %arg0, %c0_i32 : i32, i32
  }
  func.func @transform_1(%arg0: i32, %arg1: memref<1xf32, #tpu.memory_space<smem>>) -> (i32, i32) {
    %c0_i32 = arith.constant 0 : i32
    %c0_i32_0 = arith.constant 0 : i32
    return %arg0, %c0_i32 : i32, i32
  }
  func.func @transform_2(%arg0: i32, %arg1: memref<1xf32, #tpu.memory_space<smem>>) -> (i32, i32) {
    %c0_i32 = arith.constant 0 : i32
    %c0_i32_0 = arith.constant 0 : i32
    %c0_i32_1 = arith.constant 0 : i32
    return %c0_i32, %c0_i32_0 : i32, i32
  }
}

</mosaic_0001>

<bundles_post_ra>
// kernel: tpu_custom_call.1
= control target key start
LH: loop header
LB: loop body
LE: loop exit
PB: predicated region body
PF: predicated region fallthrough
CT: control target
= control target key end

     0   :  { %9 = vsyncpa [#allocation5], 0  ;;  %s225_s0 = inlined_call_operand.<no memory space> [shape: f32[1], index: 0, kind: input, shape index: {}]   ;;  %s226_s1 = inlined_call_operand.hbm [shape: f32[8,128], index: 1, kind: input, shape index: {}]   ;;  %s227_s2 = inlined_call_operand.hbm [shape: f32[8,128], index: 2, kind: input, shape index: {}]   ;;  %s228_s3 = inlined_call_operand.hbm [shape: s32[8,128], index: 3, kind: output, shape index: {}]  }
   0x1   :  { %10 = vsyncpa [#allocation8], 0 }
   0x2   :  { %11 = vsyncpa [#allocation6], 0  ;;  %s17_s14 = sshll.u32 %s226_s1, 4  ;;  %s189_s15 = smov [#allocation4]   ;;  %s18_s14 = int_to_ptr.hbm [resolvable:$true] %s17_s14 }
   0x3   :  { %s19_s16 = sshll.u32 %s189_s15, 4  ;;  %s28_s19 = sshll.u32 %s227_s2, 4  ;;  %s20_s16 = int_to_ptr.vmem [resolvable:$true] %s19_s16  ;;  %s29_s19 = int_to_ptr.hbm [resolvable:$true] %s28_s19 }
   0x4   :  { %22 = dma.hbm_to_vmem [thread:$0]  %s18_s14, 128, %s20_s16, [#allocation5]  }
   0x5   :  { %s190_s20 = smov [#allocation7]  }
   0x6   :  { %s30_s21 = sshll.u32 %s190_s20, 4  ;;  %s31_s21 = int_to_ptr.vmem [resolvable:$true] %s30_s21 }
   0x7   :  { %33 = dma.hbm_to_vmem [thread:$0]  %s29_s19, 128, %s31_s21, [#allocation8]  }
   0x8   :  { %183 = dma.done.wait [#allocation5], 128  }
   0x9   :  { %184 = vsyncadd [#allocation5], 4294967168 }
   0xa   :  { %185 = dma.done.wait [#allocation8], 128  }
   0xb   :  { %186 = vsyncadd [#allocation8], 4294967168  ;;  %v66_v0 = vlaneseq  ;;  %v48_v2 = vld [vmem:[#allocation7] sm:$0xff]  ;;  %v51_v12 = vstv %s225_s0  ;;  %v47_v13 = vld [vmem:[#allocation4] sm:$0xff]  ;;  %s191_s22 = smov [#allocation9]   ;;  %s88_s26 = sshll.u32 %s228_s3, 4  ;;  %s89_s26 = int_to_ptr.hbm [resolvable:$true] %s88_s26 }
   0xc   :  { %v101_v3 = vcvt.f32.s32 %v48_v2  ;;  %v99_v4 = vand.u32 2147483647, %v48_v2  ;;  %v104_v8 = vand.u32 2147483648, %v48_v2  ;;  %s86_s23 = sshll.u32 %s191_s22, 4  ;;  %v192_v16 = vmov 0   ;;  %s87_s23 = int_to_ptr.vmem [resolvable:$true] %s86_s23 }
   0xd   :  { %v67_v1 = vshrl.u32 %v66_v0, 7  ;;  %v69_v5 = vand.u32 127, %v66_v0 }
   0xe   :  { %v102_v7 = vcvt.s32.f32 %v101_v3  ;;  %vm100_vm0 = vcmp.lt.f32.partialorder %v99_v4, 8388608.0 }
   0xf   :  { %v70_v6 = vmul.u32 128, %v67_v1 }
  0x10   :  { %v103_v9 = vand.u32 2147483647, %v102_v7 }
  0x11   :  { %v71_v10 = vadd.s32 %v70_v6, %v69_v5 }
  0x12   :  { %v105_v11 = vor.u32 %v104_v8, %v103_v9 }
  0x13   :  { %vm75_vm2 = vcmp.lt.s32.totalorder %v71_v10, 8 }
  0x14   :  { %v106_v14 = vsel %vm100_vm0, %v105_v11, %v48_v2 }
  0x15   :  { %vm52_vm1 = vcmp.gt.f32.partialorder %v106_v14, %v51_v12 }
  0x16   :  { %v53_v15 = vsel %vm52_vm1, %v51_v12, %v106_v14 }
  0x17   :  { %vm54_vm3 = vcmp.eq.f32.partialorder %v53_v15, %v47_v13 }
  0x18   :  { %vm76_vm4 = vmand %vm54_vm3, %vm75_vm2 }
  0x19   :  { %v77_v17 = vsel %vm76_vm4, 1, %v192_v16 }
  0x1a   :  { %80 = vst [vmem:[#allocation9] sm:$0xff] %v77_v17 }
  0x1b   :  { %91 = dma.vmem_to_hbm [thread:$0]  %s87_s23, 128, %s89_s26, [#allocation6]  }
  0x1c   :  { %187 = dma.done.wait [#allocation6], 128  }
  0x1d   :  { %188 = vsyncadd [#allocation6], 4294967168 }
  0x1e   :  { %96 = vsyncpa [#allocation5], 1 }
  0x1f   :  { %97 = vsyncpa [#allocation8], 1 }
  0x20   :  { %98 = vsyncpa [#allocation6], 1 }

</bundles_post_ra>
